<compile_context>
chip_gen: v5e
topology: v5e:2x2
jax: 0.10.0
libtpu: 0.0.40
codegen_flags: <defaults>
</compile_context>

<pallas_src>
import jax
import jax.numpy as jnp
from jax.experimental import pallas as pl
from jax.experimental.pallas import tpu as pltpu

LANE = 128


def _round_up(x, m):
    return ((x + m - 1) // m) * m


# ------------------------------ fused ExpNet ------------------------------------

def expnet_forward(params, lower_bounds, upper_bounds, layers):
    p = int(params["p"])
    assert p % 8 == 0, "p must be a multiple of 8 for aligned slab slices"
    f32 = jnp.float32
    batch = lower_bounds[0].shape[0]
    num_mu = len(lower_bounds)
    dims = [int(lb.reshape(batch, -1).shape[1]) for lb in lower_bounds]

    relu_positions = [i + 1 for i, l in enumerate(layers) if l["type"] == "relu"]
    len_layers = relu_positions[num_mu - 2]

    # shared padded lane width for every node-indexed row (pre / mu / bounds / scores)
    Lmax = _round_up(max(batch * dims[k] for k in range(1, num_mu)), LANE)
    num_relu = num_mu - 1
    NRL = num_relu * Lmax            # lanes of the batched relu-info block
    OUT_L = num_relu * Lmax          # lanes of the single score row

    # -------- slab A: fc weight matrices, p-major, 8-row-aligned blocks (8p+8, p) ---
    fcw = jnp.concatenate(
        [
            params["fc1_1_w"],                    # block 0
            params["fc2_w"][:, :p],               # block 1 (fc2a)
            params["fc2_w"][:, p:],               # block 2 (fc2b)
            params["fc2_1_w"],                    # block 3
            params["fc3_w"][:, :p],               # block 4 (fc3a)
            params["fc3_w"][:, p:],               # block 5 (fc3b)
            params["fc3_1_w"],                    # block 6
            params["fnode_w"],                    # block 7
            jnp.zeros((8, p), f32).at[0, :].set(params["fscore_w"].reshape(p)),  # blk 8
        ],
        axis=0,
    ).astype(f32)                                 # (8p + 8, p)

    # -------- slab B: fc column vectors (p, 12) -------------------------------------
    # cols: 0..2 fc1 weight columns, 3 fc1_b, 4 fc1_1_b, 5 fc2_b, 6 fc2_1_b,
    #       7 fc3_b, 8 fc3_1_b, 9 fnode_b, 10 rowsum(fc2a) (ones-mu trick), 11 fscore_b
    fcc = jnp.stack(
        [
            params["fc1_w"][:, 0], params["fc1_w"][:, 1], params["fc1_w"][:, 2],
            params["fc1_b"], params["fc1_1_b"],
            params["fc2_b"], params["fc2_1_b"],
            params["fc3_b"], params["fc3_1_b"],
            params["fnode_b"],
            params["fc2_w"][:, :p].sum(axis=1),
            jnp.full((p,), params["fscore_b"].reshape(())),
        ],
        axis=1,
    ).astype(f32)                                 # (p, 12)

    # -------- slab C: verified-net block-diag weights / biases / pre0 row -----------
    def pad_to(x, rows, cols):
        return jnp.zeros((rows, cols), f32).at[: x.shape[0], : x.shape[1]].set(
            x.astype(f32))

    def block_diag(W):
        d_out, d_in = W.shape
        bd = jnp.zeros((batch * d_out, batch * d_in), f32)
        for b in range(batch):
            bd = bd.at[b * d_out:(b + 1) * d_out, b * d_in:(b + 1) * d_in].set(W)
        return bd

    net_blocks, net_off = [], {}
    cur = 0

    def add_net(name, mat, rows):
        nonlocal cur
        net_blocks.append(pad_to(mat, rows, Lmax))
        net_off[name] = cur
        cur += rows

    layer_meta = []
    relu_bound_idx = []
    lin_i, bound_idx = 0, 1
    for layer in layers[:len_layers]:
        if layer["type"] == "linear":
            W = jnp.asarray(layer["W"], f32)
            b = jnp.asarray(layer["b"], f32)
            d_out = W.shape[0]
            bc_row = jnp.tile(b, batch).reshape(1, batch * d_out)
            if lin_i == 0:
                # mu[0] == ones  =>  W @ mu[0] is constant across p: fold to one row.
                pre0 = jnp.tile(W.sum(axis=1) + b, batch).reshape(1, batch * d_out)
                add_net("pre0", pre0, 8)
                layer_meta.append(("lin0", None))
            else:
                Wbd = block_diag(W)                          # batch folded into lanes
                add_net(f"Wt{lin_i}", Wbd.T, Lmax)           # fwd: mu_T @ blkdiag(W).T
                add_net(f"W{lin_i}", Wbd, Lmax)              # bwd: (T - b) @ blkdiag(W)
                add_net(f"bc{lin_i}", bc_row, 8)
                layer_meta.append(("linear", lin_i))
            lin_i += 1
            bound_idx += 1
        elif layer["type"] == "relu":
            relu_bound_idx.append(bound_idx - 1)
            layer_meta.append(("relu", None))
        else:
            # TODO(synk): Conv2d / ConvTranspose2d / Flatten branches of
            # EmbedLayerUpdate are not implemented in this synthetic setup.
            raise NotImplementedError(layer["type"])

    net = jnp.concatenate(net_blocks, axis=0)                # (R_net, Lmax)

    # -------- slab D: bounds, lane-major (2, num_relu * Lmax) -----------------------
    lb_row = jnp.zeros((NRL,), f32)
    ub_row = jnp.zeros((NRL,), f32)
    for r, bidx in enumerate(relu_bound_idx):
        w = batch * dims[bidx]
        lb_row = lb_row.at[r * Lmax:r * Lmax + w].set(lower_bounds[bidx].reshape(-1))
        ub_row = ub_row.at[r * Lmax:r * Lmax + w].set(upper_bounds[bidx].reshape(-1))
    bounds = jnp.stack([lb_row, ub_row], axis=0)             # (2, NRL)

    out_shape = jax.ShapeDtypeStruct((8, OUT_L), f32)        # row 0 holds the scores

    # ------------------------------- the kernel -------------------------------------
    def kernel(fcw_ref, fcc_ref, net_ref, bnd_ref, out_ref):
        def mm(a, b):
            return jnp.dot(a, b, preferred_element_type=jnp.float32)

        def relu(x):
            return jnp.maximum(x, 0.0)

        fcc = fcc_ref[...]

        def ccol(j):                                         # (p, 1) column
            return fcc[:, j:j + 1]

        F11 = fcw_ref[0 * p:1 * p, :]
        F2A = fcw_ref[1 * p:2 * p, :]
        F2B = fcw_ref[2 * p:3 * p, :]
        F21 = fcw_ref[3 * p:4 * p, :]
        F3A = fcw_ref[4 * p:5 * p, :]
        F3B = fcw_ref[5 * p:6 * p, :]
        F31 = fcw_ref[6 * p:7 * p, :]
        FN = fcw_ref[7 * p:8 * p, :]
        WS8 = fcw_ref[8 * p:8 * p + 8, :]                    # row 0 = fscore weights

        b1c, b11c = ccol(3), ccol(4)
        b2c, b21c = ccol(5), ccol(6)
        b3c, b31c = ccol(7), ccol(8)
        bnc = ccol(9)
        w2a_rs = ccol(10)
        bs = fcc[0:1, 11:12]                                 # (1, 1) fscore bias

        # ---- ratio + fc1 + fc1_1 for ALL relu layers at once (lane-dense) ----
        lb = bnd_ref[0:1, :]                                 # (1, NRL)
        ub = bnd_ref[1:2, :]
        lower_temp = lb - relu(lb)
        upper_temp = relu(ub)
        diff = upper_temp - lower_temp
        upper_ratio = upper_temp / (diff + 1e-8)             # exact (matches reference)
        lower_ratio = 1.0 - upper_ratio
        hT = relu(ccol(0) * upper_ratio + ccol(1) * lower_ratio
                  + ccol(2) * diff + b1c)                    # (p, NRL)
        embT_all = mm(F11, hT) + b11c                        # (p, NRL)

        # ---- forward message pass (p-major, block-diag, batch folded in lanes) ----
        MT = [None] * num_mu                                 # MT[k]: (p, Lmax)
        pre_term = None                                      # fc2a @ pre_T
        r = 0
        for kind, li in layer_meta:
            if kind == "lin0":
                o = net_off["pre0"]
                pre_term = w2a_rs * net_ref[o:o + 1, :]      # rank-1 (mu[0] == ones)
            elif kind == "linear":
                o = net_off[f"Wt{li}"]
                ob = net_off[f"bc{li}"]
                preT = mm(MT[r], net_ref[o:o + Lmax, :]) + net_ref[ob:ob + 1, :]
                pre_term = mm(F2A, preT)
            else:                                            # relu
                r += 1
                embT = embT_all[:, (r - 1) * Lmax:r * Lmax]
                gT = relu(pre_term + mm(F2B, embT) + b2c)
                MT[r] = mm(F21, gT) + b21c

        # ---- backward message pass (transpose-free T-form) ----
        TT = None
        for kind, li in reversed(layer_meta[1:]):
            if kind == "relu":
                if TT is not None:
                    gT = relu(mm(F3A, TT) + mm(F3B, MT[r]) + b3c)
                    MT[r] = mm(F31, gT) + b31c
                TT = MT[r]
                r -= 1
            else:                                            # linear (never lin0)
                o = net_off[f"W{li}"]
                ob = net_off[f"bc{li}"]
                TT = mm(TT - net_ref[ob:ob + 1, :], net_ref[o:o + Lmax, :])

        # ---- scores: one lane-dense slab, single unmasked full-ref store ----
        MT_all = jnp.concatenate([MT[k] for k in range(1, num_mu)], axis=1)  # (p,OUT_L)
        hk = relu(mm(FN, MT_all) + bnc)
        out_ref[...] = mm(WS8, hk) + bs                      # row 0 = scores + bias

    # rough advisory cost for the XLA scheduler
    n_lin_bd = lin_i - 1
    flops = 2 * p * p * NRL                                  # batched fc1_1
    flops += num_relu * 2 * (2 * p * p * Lmax)               # fwd fc2 / fc2_1
    flops += n_lin_bd * (2 * p * Lmax * Lmax + 2 * p * p * Lmax)   # fwd linears
    flops += max(num_relu - 1, 0) * 3 * (2 * p * p * Lmax)   # bwd fc3 chain
    flops += n_lin_bd * (2 * p * Lmax * Lmax)                # bwd linears
    flops += 2 * p * p * OUT_L + 2 * 8 * p * OUT_L           # fnode + fscore
    bytes_accessed = 4 * (fcw.size + fcc.size + net.size + bounds.size + 8 * OUT_L)

    scores_row = pl.pallas_call(
        kernel,
        out_shape=out_shape,
        in_specs=[pl.BlockSpec(memory_space=pltpu.MemorySpace.VMEM)] * 4,
        out_specs=pl.BlockSpec(memory_space=pltpu.MemorySpace.VMEM),
        compiler_params=pltpu.CompilerParams(vmem_limit_bytes=32 * 1024 * 1024),
        cost_estimate=pl.CostEstimate(flops=int(flops), transcendentals=0,
                                      bytes_accessed=int(bytes_accessed)),
    )(fcw, fcc, net, bounds)
    # TODO(synk): at production sizes add a ("parallel", ...) grid over independent
    # work for v7x's 2 TensorCores and re-budget the all-resident VMEM footprint
    # against 64 MiB; cast matmul operands to bf16 once dims reach MXU-relevant scale.

    scores = []
    for k in range(1, num_mu):
        w = batch * dims[k]
        seg = scores_row[0, (k - 1) * Lmax:(k - 1) * Lmax + w]
        scores.append(seg.reshape(lower_bounds[k].shape))
    return scores


# ------------------------------ pure-JAX reference -------------------------------

def expnet_forward_ref(params, lower_bounds, upper_bounds, layers):
    p = params["p"]
    batch = lower_bounds[0].shape[0]

    def lin(x, w, b):
        return x @ w.T + b

    mu = [jnp.ones((batch, lb.reshape(batch, -1).shape[1], p), jnp.float32)
          for lb in lower_bounds]
    relu_positions = [i + 1 for i, l in enumerate(layers) if l["type"] == "relu"]
    len_layers = relu_positions[len(lower_bounds) - 2]

    relu_idx, bound_idx = 0, 1
    pre_flat = lb = ub = None
    for layer in layers[:len_layers]:
        if layer["type"] == "linear":
            W, b = layer["W"], layer["b"]
            pre = jnp.einsum("oi,bip->bop", W, mu[relu_idx]) + b[None, :, None]
            pre_flat = pre.reshape(-1, p)
            lb = lower_bounds[bound_idx].reshape(-1)
            ub = upper_bounds[bound_idx].reshape(-1)
            bound_idx += 1
        else:
            lt = lb - jnp.maximum(lb, 0.0)
            ut = jnp.maximum(ub, 0.0)
            diff = ut - lt
            ur = ut / (diff + 1e-8)
            lr = 1.0 - ur
            info = jnp.stack([ur, lr, diff], axis=1)
            emb = lin(jnp.maximum(lin(info, params["fc1_w"], params["fc1_b"]), 0.0),
                      params["fc1_1_w"], params["fc1_1_b"])
            cat = jnp.concatenate([pre_flat, emb], axis=1)
            emb = lin(jnp.maximum(lin(cat, params["fc2_w"], params["fc2_b"]), 0.0),
                      params["fc2_1_w"], params["fc2_1_b"])
            relu_idx += 1
            mu[relu_idx] = emb.reshape(mu[relu_idx].shape)

    pre_back = None
    for layer in reversed(layers[1:len_layers]):
        if layer["type"] == "relu":
            if pre_back is not None:
                d = mu[relu_idx].shape[1]
                pb = jnp.transpose(pre_back.reshape(batch, p, d), (0, 2, 1)).reshape(-1, p)
                cat = jnp.concatenate([pb, mu[relu_idx].reshape(-1, p)], axis=1)
                emb = lin(jnp.maximum(lin(cat, params["fc3_w"], params["fc3_b"]), 0.0),
                          params["fc3_1_w"], params["fc3_1_b"])
                mu[relu_idx] = emb.reshape(mu[relu_idx].shape)
            d = mu[relu_idx].shape[1]
            pre_back = jnp.transpose(mu[relu_idx], (0, 2, 1)).reshape(batch * p, d)
            relu_idx -= 1
        else:
            W, b = layer["W"], layer["b"]
            pre_back = (pre_back - b[None, :]) @ W

    scores = []
    for k in range(1, len(mu)):
        mu_flat = mu[k].reshape(-1, p)
        s = lin(jnp.maximum(lin(mu_flat, params["fnode_w"], params["fnode_b"]), 0.0),
                params["fscore_w"], params["fscore_b"])
        scores.append(s.reshape(lower_bounds[k].shape))
    return scores


# ------------------------------------ main ----------------------------------------

if __name__ == "__main__":
    key = jax.random.PRNGKey(0)
    p = 32
    batch = 2
    dims = [16, 16, 8]   # input dim -> hidden (ReLU 1) -> hidden (ReLU 2)

    keys = jax.random.split(key, 32)
    kit = iter(keys)

    def rnd(shape, scale=0.2):
        return jax.random.normal(next(kit), shape, jnp.float32) * scale

    params = {
        "p": p,
        "fc1_w": rnd((p, 3)),      "fc1_b": rnd((p,)),
        "fc1_1_w": rnd((p, p)),    "fc1_1_b": rnd((p,)),
        "fc2_w": rnd((p, 2 * p)),  "fc2_b": rnd((p,)),
        "fc2_1_w": rnd((p, p)),    "fc2_1_b": rnd((p,)),
        "fc3_w": rnd((p, 2 * p)),  "fc3_b": rnd((p,)),
        "fc3_1_w": rnd((p, p)),    "fc3_1_b": rnd((p,)),
        "fnode_w": rnd((p, p)),    "fnode_b": rnd((p,)),
        "fscore_w": rnd((1, p)),   "fscore_b": rnd((1,)),
    }

    # synthetic verified network: Linear -> ReLU -> Linear -> ReLU
    layers = []
    for k in range(1, len(dims)):
        layers.append({"type": "linear",
                       "W": rnd((dims[k], dims[k - 1]), 0.3),
                       "b": rnd((dims[k],), 0.3)})
        layers.append({"type": "relu"})

    lower_bounds, upper_bounds = [], []
    for d in dims:
        center = jax.random.normal(next(kit), (batch, d), jnp.float32)
        radius = jnp.abs(jax.random.normal(next(kit), (batch, d), jnp.float32))
        lower_bounds.append(center - radius)
        upper_bounds.append(center + radius)

    scores = expnet_forward(params, lower_bounds, upper_bounds, layers)
    scores = jax.block_until_ready(scores)

    ref_scores = expnet_forward_ref(params, lower_bounds, upper_bounds, layers)
    for s, r in zip(scores, ref_scores):
        assert s.shape == r.shape, (s.shape, r.shape)
        assert jnp.allclose(s, r, rtol=2e-2, atol=2e-2), float(jnp.max(jnp.abs(s - r)))

    print("KERNEL_OK")
</pallas_src>

<mosaic_0001>
module attributes {stable_mosaic.version = 11 : i64} {
  func.func @kernel(%arg0: memref<264x32xf32, #tpu.memory_space<vmem>>, %arg1: memref<32x12xf32, #tpu.memory_space<vmem>>, %arg2: memref<272x128xf32, #tpu.memory_space<vmem>>, %arg3: memref<2x256xf32, #tpu.memory_space<vmem>>, %arg4: memref<8x256xf32, #tpu.memory_space<vmem>>) attributes {dimension_semantics = [], scalar_prefetch = 0 : i64, scratch_operands = 0 : i64, tpu.core_type = #tpu.core_type<tc>} {
    %c0 = arith.constant 0 : index
    %c0_0 = arith.constant 0 : index
    %0 = vector.load %arg1[%c0, %c0_0] : memref<32x12xf32, #tpu.memory_space<vmem>>, vector<32x12xf32>
    %c0_1 = arith.constant 0 : index
    %c0_2 = arith.constant 0 : index
    %1 = vector.load %arg0[%c0_1, %c0_2] : memref<264x32xf32, #tpu.memory_space<vmem>>, vector<32x32xf32>
    %c32 = arith.constant 32 : index
    %c0_3 = arith.constant 0 : index
    %2 = vector.load %arg0[%c32, %c0_3] : memref<264x32xf32, #tpu.memory_space<vmem>>, vector<32x32xf32>
    %c64 = arith.constant 64 : index
    %c0_4 = arith.constant 0 : index
    %3 = vector.load %arg0[%c64, %c0_4] : memref<264x32xf32, #tpu.memory_space<vmem>>, vector<32x32xf32>
    %c96 = arith.constant 96 : index
    %c0_5 = arith.constant 0 : index
    %4 = vector.load %arg0[%c96, %c0_5] : memref<264x32xf32, #tpu.memory_space<vmem>>, vector<32x32xf32>
    %c128 = arith.constant 128 : index
    %c0_6 = arith.constant 0 : index
    %5 = vector.load %arg0[%c128, %c0_6] : memref<264x32xf32, #tpu.memory_space<vmem>>, vector<32x32xf32>
    %c160 = arith.constant 160 : index
    %c0_7 = arith.constant 0 : index
    %6 = vector.load %arg0[%c160, %c0_7] : memref<264x32xf32, #tpu.memory_space<vmem>>, vector<32x32xf32>
    %c192 = arith.constant 192 : index
    %c0_8 = arith.constant 0 : index
    %7 = vector.load %arg0[%c192, %c0_8] : memref<264x32xf32, #tpu.memory_space<vmem>>, vector<32x32xf32>
    %c224 = arith.constant 224 : index
    %c0_9 = arith.constant 0 : index
    %8 = vector.load %arg0[%c224, %c0_9] : memref<264x32xf32, #tpu.memory_space<vmem>>, vector<32x32xf32>
    %c256 = arith.constant 256 : index
    %c0_10 = arith.constant 0 : index
    %9 = vector.load %arg0[%c256, %c0_10] : memref<264x32xf32, #tpu.memory_space<vmem>>, vector<8x32xf32>
    %10 = vector.extract_strided_slice %0 {offsets = [0, 3], sizes = [32, 1], strides = [1, 1]} : vector<32x12xf32> to vector<32x1xf32>
    %11 = vector.extract_strided_slice %0 {offsets = [0, 4], sizes = [32, 1], strides = [1, 1]} : vector<32x12xf32> to vector<32x1xf32>
    %12 = vector.extract_strided_slice %0 {offsets = [0, 5], sizes = [32, 1], strides = [1, 1]} : vector<32x12xf32> to vector<32x1xf32>
    %13 = vector.extract_strided_slice %0 {offsets = [0, 6], sizes = [32, 1], strides = [1, 1]} : vector<32x12xf32> to vector<32x1xf32>
    %14 = vector.extract_strided_slice %0 {offsets = [0, 7], sizes = [32, 1], strides = [1, 1]} : vector<32x12xf32> to vector<32x1xf32>
    %15 = vector.extract_strided_slice %0 {offsets = [0, 8], sizes = [32, 1], strides = [1, 1]} : vector<32x12xf32> to vector<32x1xf32>
    %16 = vector.extract_strided_slice %0 {offsets = [0, 9], sizes = [32, 1], strides = [1, 1]} : vector<32x12xf32> to vector<32x1xf32>
    %17 = vector.extract_strided_slice %0 {offsets = [0, 10], sizes = [32, 1], strides = [1, 1]} : vector<32x12xf32> to vector<32x1xf32>
    %18 = vector.extract_strided_slice %0 {offsets = [0, 11], sizes = [1, 1], strides = [1, 1]} : vector<32x12xf32> to vector<1x1xf32>
    %c0_11 = arith.constant 0 : index
    %c0_12 = arith.constant 0 : index
    %19 = vector.load %arg3[%c0_11, %c0_12] : memref<2x256xf32, #tpu.memory_space<vmem>>, vector<1x256xf32>
    %c1 = arith.constant 1 : index
    %c0_13 = arith.constant 0 : index
    %20 = vector.load %arg3[%c1, %c0_13] : memref<2x256xf32, #tpu.memory_space<vmem>>, vector<1x256xf32>
    %cst = arith.constant 0.000000e+00 : f32
    %21 = vector.broadcast %cst : f32 to vector<1x256xf32>
    %22 = arith.maximumf %19, %21 : vector<1x256xf32>
    %23 = arith.subf %19, %22 : vector<1x256xf32>
    %cst_14 = arith.constant 0.000000e+00 : f32
    %24 = vector.broadcast %cst_14 : f32 to vector<1x256xf32>
    %25 = arith.maximumf %20, %24 : vector<1x256xf32>
    %26 = arith.subf %25, %23 : vector<1x256xf32>
    %cst_15 = arith.constant 9.99999993E-9 : f32
    %27 = vector.broadcast %cst_15 : f32 to vector<1x256xf32>
    %28 = arith.addf %26, %27 : vector<1x256xf32>
    %29 = arith.divf %25, %28 : vector<1x256xf32>
    %cst_16 = arith.constant 1.000000e+00 : f32
    %30 = vector.broadcast %cst_16 : f32 to vector<1x256xf32>
    %31 = arith.subf %30, %29 : vector<1x256xf32>
    %32 = vector.extract_strided_slice %0 {offsets = [0, 0], sizes = [32, 1], strides = [1, 1]} : vector<32x12xf32> to vector<32x1xf32>
    %33 = vector.broadcast %32 : vector<32x1xf32> to vector<32x256xf32>
    %34 = vector.broadcast %29 : vector<1x256xf32> to vector<32x256xf32>
    %35 = arith.mulf %33, %34 : vector<32x256xf32>
    %36 = vector.extract_strided_slice %0 {offsets = [0, 1], sizes = [32, 1], strides = [1, 1]} : vector<32x12xf32> to vector<32x1xf32>
    %37 = vector.broadcast %36 : vector<32x1xf32> to vector<32x256xf32>
    %38 = vector.broadcast %31 : vector<1x256xf32> to vector<32x256xf32>
    %39 = arith.mulf %37, %38 : vector<32x256xf32>
    %40 = arith.addf %35, %39 : vector<32x256xf32>
    %41 = vector.extract_strided_slice %0 {offsets = [0, 2], sizes = [32, 1], strides = [1, 1]} : vector<32x12xf32> to vector<32x1xf32>
    %42 = vector.broadcast %41 : vector<32x1xf32> to vector<32x256xf32>
    %43 = vector.broadcast %26 : vector<1x256xf32> to vector<32x256xf32>
    %44 = arith.mulf %42, %43 : vector<32x256xf32>
    %45 = arith.addf %40, %44 : vector<32x256xf32>
    %46 = vector.broadcast %10 : vector<32x1xf32> to vector<32x256xf32>
    %47 = arith.addf %45, %46 : vector<32x256xf32>
    %cst_17 = arith.constant 0.000000e+00 : f32
    %48 = vector.broadcast %cst_17 : f32 to vector<32x256xf32>
    %49 = arith.maximumf %47, %48 : vector<32x256xf32>
    %cst_18 = arith.constant dense<0.000000e+00> : vector<32x256xf32>
    %50 = tpu.matmul %1, %49, %cst_18 {dimension_numbers = #tpu.dot_dimension_numbers<[1], [0], [0], [1], [0, 0, 1, 1], [], []>} : vector<32x32xf32>, vector<32x256xf32>, vector<32x256xf32> -> vector<32x256xf32>
    %51 = vector.broadcast %11 : vector<32x1xf32> to vector<32x256xf32>
    %52 = arith.addf %50, %51 : vector<32x256xf32>
    %c0_19 = arith.constant 0 : index
    %c0_20 = arith.constant 0 : index
    %53 = vector.load %arg2[%c0_19, %c0_20] : memref<272x128xf32, #tpu.memory_space<vmem>>, vector<1x128xf32>
    %54 = vector.broadcast %17 : vector<32x1xf32> to vector<32x128xf32>
    %55 = vector.broadcast %53 : vector<1x128xf32> to vector<32x128xf32>
    %56 = arith.mulf %54, %55 : vector<32x128xf32>
    %57 = vector.extract_strided_slice %52 {offsets = [0, 0], sizes = [32, 128], strides = [1, 1]} : vector<32x256xf32> to vector<32x128xf32>
    %cst_21 = arith.constant dense<0.000000e+00> : vector<32x128xf32>
    %58 = tpu.matmul %3, %57, %cst_21 {dimension_numbers = #tpu.dot_dimension_numbers<[1], [0], [0], [1], [0, 0, 1, 1], [], []>} : vector<32x32xf32>, vector<32x128xf32>, vector<32x128xf32> -> vector<32x128xf32>
    %59 = arith.addf %56, %58 : vector<32x128xf32>
    %60 = vector.broadcast %12 : vector<32x1xf32> to vector<32x128xf32>
    %61 = arith.addf %59, %60 : vector<32x128xf32>
    %cst_22 = arith.constant 0.000000e+00 : f32
    %62 = vector.broadcast %cst_22 : f32 to vector<32x128xf32>
    %63 = arith.maximumf %61, %62 : vector<32x128xf32>
    %cst_23 = arith.constant dense<0.000000e+00> : vector<32x128xf32>
    %64 = tpu.matmul %4, %63, %cst_23 {dimension_numbers = #tpu.dot_dimension_numbers<[1], [0], [0], [1], [0, 0, 1, 1], [], []>} : vector<32x32xf32>, vector<32x128xf32>, vector<32x128xf32> -> vector<32x128xf32>
    %65 = vector.broadcast %13 : vector<32x1xf32> to vector<32x128xf32>
    %66 = arith.addf %64, %65 : vector<32x128xf32>
    %c8 = arith.constant 8 : index
    %c0_24 = arith.constant 0 : index
    %67 = vector.load %arg2[%c8, %c0_24] : memref<272x128xf32, #tpu.memory_space<vmem>>, vector<128x128xf32>
    %cst_25 = arith.constant dense<0.000000e+00> : vector<32x128xf32>
    %68 = tpu.matmul %66, %67, %cst_25 {dimension_numbers = #tpu.dot_dimension_numbers<[1], [0], [0], [1], [0, 0, 1, 1], [], []>} : vector<32x128xf32>, vector<128x128xf32>, vector<32x128xf32> -> vector<32x128xf32>
    %c264 = arith.constant 264 : index
    %c0_26 = arith.constant 0 : index
    %69 = vector.load %arg2[%c264, %c0_26] : memref<272x128xf32, #tpu.memory_space<vmem>>, vector<1x128xf32>
    %70 = vector.broadcast %69 : vector<1x128xf32> to vector<32x128xf32>
    %71 = arith.addf %68, %70 : vector<32x128xf32>
    %cst_27 = arith.constant dense<0.000000e+00> : vector<32x128xf32>
    %72 = tpu.matmul %2, %71, %cst_27 {dimension_numbers = #tpu.dot_dimension_numbers<[1], [0], [0], [1], [0, 0, 1, 1], [], []>} : vector<32x32xf32>, vector<32x128xf32>, vector<32x128xf32> -> vector<32x128xf32>
    %73 = vector.extract_strided_slice %52 {offsets = [0, 128], sizes = [32, 128], strides = [1, 1]} : vector<32x256xf32> to vector<32x128xf32>
    %cst_28 = arith.constant dense<0.000000e+00> : vector<32x128xf32>
    %74 = tpu.matmul %3, %73, %cst_28 {dimension_numbers = #tpu.dot_dimension_numbers<[1], [0], [0], [1], [0, 0, 1, 1], [], []>} : vector<32x32xf32>, vector<32x128xf32>, vector<32x128xf32> -> vector<32x128xf32>
    %75 = arith.addf %72, %74 : vector<32x128xf32>
    %76 = vector.broadcast %12 : vector<32x1xf32> to vector<32x128xf32>
    %77 = arith.addf %75, %76 : vector<32x128xf32>
    %cst_29 = arith.constant 0.000000e+00 : f32
    %78 = vector.broadcast %cst_29 : f32 to vector<32x128xf32>
    %79 = arith.maximumf %77, %78 : vector<32x128xf32>
    %cst_30 = arith.constant dense<0.000000e+00> : vector<32x128xf32>
    %80 = tpu.matmul %4, %79, %cst_30 {dimension_numbers = #tpu.dot_dimension_numbers<[1], [0], [0], [1], [0, 0, 1, 1], [], []>} : vector<32x32xf32>, vector<32x128xf32>, vector<32x128xf32> -> vector<32x128xf32>
    %81 = vector.broadcast %13 : vector<32x1xf32> to vector<32x128xf32>
    %82 = arith.addf %80, %81 : vector<32x128xf32>
    %c264_31 = arith.constant 264 : index
    %c0_32 = arith.constant 0 : index
    %83 = vector.load %arg2[%c264_31, %c0_32] : memref<272x128xf32, #tpu.memory_space<vmem>>, vector<1x128xf32>
    %84 = vector.broadcast %83 : vector<1x128xf32> to vector<32x128xf32>
    %85 = arith.subf %82, %84 : vector<32x128xf32>
    %c136 = arith.constant 136 : index
    %c0_33 = arith.constant 0 : index
    %86 = vector.load %arg2[%c136, %c0_33] : memref<272x128xf32, #tpu.memory_space<vmem>>, vector<128x128xf32>
    %cst_34 = arith.constant dense<0.000000e+00> : vector<32x128xf32>
    %87 = tpu.matmul %85, %86, %cst_34 {dimension_numbers = #tpu.dot_dimension_numbers<[1], [0], [0], [1], [0, 0, 1, 1], [], []>} : vector<32x128xf32>, vector<128x128xf32>, vector<32x128xf32> -> vector<32x128xf32>
    %cst_35 = arith.constant dense<0.000000e+00> : vector<32x128xf32>
    %88 = tpu.matmul %5, %87, %cst_35 {dimension_numbers = #tpu.dot_dimension_numbers<[1], [0], [0], [1], [0, 0, 1, 1], [], []>} : vector<32x32xf32>, vector<32x128xf32>, vector<32x128xf32> -> vector<32x128xf32>
    %cst_36 = arith.constant dense<0.000000e+00> : vector<32x128xf32>
    %89 = tpu.matmul %6, %66, %cst_36 {dimension_numbers = #tpu.dot_dimension_numbers<[1], [0], [0], [1], [0, 0, 1, 1], [], []>} : vector<32x32xf32>, vector<32x128xf32>, vector<32x128xf32> -> vector<32x128xf32>
    %90 = arith.addf %88, %89 : vector<32x128xf32>
    %91 = vector.broadcast %14 : vector<32x1xf32> to vector<32x128xf32>
    %92 = arith.addf %90, %91 : vector<32x128xf32>
    %cst_37 = arith.constant 0.000000e+00 : f32
    %93 = vector.broadcast %cst_37 : f32 to vector<32x128xf32>
    %94 = arith.maximumf %92, %93 : vector<32x128xf32>
    %cst_38 = arith.constant dense<0.000000e+00> : vector<32x128xf32>
    %95 = tpu.matmul %7, %94, %cst_38 {dimension_numbers = #tpu.dot_dimension_numbers<[1], [0], [0], [1], [0, 0, 1, 1], [], []>} : vector<32x32xf32>, vector<32x128xf32>, vector<32x128xf32> -> vector<32x128xf32>
    %96 = vector.broadcast %15 : vector<32x1xf32> to vector<32x128xf32>
    %97 = arith.addf %95, %96 : vector<32x128xf32>
    %98 = tpu.concatenate %97, %82 in 1 : vector<32x128xf32>, vector<32x128xf32> -> vector<32x256xf32>
    %cst_39 = arith.constant dense<0.000000e+00> : vector<32x256xf32>
    %99 = tpu.matmul %8, %98, %cst_39 {dimension_numbers = #tpu.dot_dimension_numbers<[1], [0], [0], [1], [0, 0, 1, 1], [], []>} : vector<32x32xf32>, vector<32x256xf32>, vector<32x256xf32> -> vector<32x256xf32>
    %100 = vector.broadcast %16 : vector<32x1xf32> to vector<32x256xf32>
    %101 = arith.addf %99, %100 : vector<32x256xf32>
    %cst_40 = arith.constant 0.000000e+00 : f32
    %102 = vector.broadcast %cst_40 : f32 to vector<32x256xf32>
    %103 = arith.maximumf %101, %102 : vector<32x256xf32>
    %cst_41 = arith.constant dense<0.000000e+00> : vector<8x256xf32>
    %104 = tpu.matmul %9, %103, %cst_41 {dimension_numbers = #tpu.dot_dimension_numbers<[1], [0], [0], [1], [0, 0, 1, 1], [], []>} : vector<8x32xf32>, vector<32x256xf32>, vector<8x256xf32> -> vector<8x256xf32>
    %105 = vector.broadcast %18 : vector<1x1xf32> to vector<8x256xf32>
    %106 = arith.addf %104, %105 : vector<8x256xf32>
    %c0_42 = arith.constant 0 : index
    %c0_43 = arith.constant 0 : index
    %107 = vector.load %arg4[%c0_42, %c0_43] : memref<8x256xf32, #tpu.memory_space<vmem>>, vector<8x256xf32>
    tpu.vector_store %arg4[%c0_42, %c0_43], %106 {strides = array<i32>} : memref<8x256xf32, #tpu.memory_space<vmem>>, vector<8x256xf32>,
    return
  }
}

</mosaic_0001>

<bundles_post_ra>
// kernel: tpu_custom_call.1
= control target key start
LH: loop header
LB: loop body
LE: loop exit
PB: predicated region body
PF: predicated region fallthrough
CT: control target
= control target key end

     0   :  { %v1129_v2 = vmov 1   ;;  %v1130_v3 = vmov 0   ;;  %s1557_s0 = inlined_call_operand.vmem [shape: f32[264,32], index: 0, kind: input, shape index: {}]   ;;  %s1558_s1 = inlined_call_operand.vmem [shape: f32[32,12], index: 1, kind: input, shape index: {}]   ;;  %s1559_s2 = inlined_call_operand.vmem [shape: f32[272,128], index: 2, kind: input, shape index: {}]   ;;  %s1560_s3 = inlined_call_operand.vmem [shape: f32[2,256], index: 3, kind: input, shape index: {}]   ;;  %s1561_s4 = inlined_call_operand.hbm [shape: f32[8,256], index: 4, kind: output, shape index: {}]  }
   0x1   :  { %v1170_v0 = vld [vmem:[%s1558_s1 + $0x18] sm:$0xff]  ;;  %v1175_v1 = vld [vmem:[%s1558_s1 + $0x10] sm:$0xff]  ;;  %1065 = vset.pattern.permute.xlu0 %v1129_v2  ;;  %1067 = vset.pattern.permute.xlu1 %v1130_v3 }
   0x2   :  { %125 = vperm.xlu0 %1065, %v1170_v0   ;;  %91 = vperm.xlu1 %1067, %v1175_v1  }
   0x3   :  { %9 = vsyncpa [#allocation3], 0  ;;  %v1131_v4 = vmov 2   ;;  %v1183_v5 = vld [vmem:[%s1558_s1 + $0x8] sm:$0xff]  ;;  %v1191_v6 = vld [vmem:[%s1558_s1] sm:$0xff]  ;;  %v1132_v7 = vmov 3  }
   0x4   :  { %1069 = vset.pattern.permute.xlu2 %v1131_v4  ;;  %v55_v8 = vld [vmem:[%s1560_s3] ss:$2 sm:$0x3]  ;;  %v979_v10 = vld [vmem:[%s1560_s3 + $0x1] ss:$2 sm:$0x3] }
   0x5   :  { %162 = vperm.xlu2 %1069, %v1170_v0   ;;  %v58_v9 = vmax.f32 %v55_v8, 0.0  ;;  %v60_v12 = vmax.f32 %v979_v10, 0.0  ;;  %v1133_v37 = vmov 4   ;;  %vm234_vm4 = vcmask 261120   ;;  %s1140_s29 = smov 117   ;;  %s1141_s5 = smov [#allocation2]  }
   0x6   :  { %s968_s6 = sshll.u32 %s1141_s5, 4  ;;  %s970_s9 = sshll.u32 %s1561_s4, 4  ;;  %s969_s6 = int_to_ptr.vmem [resolvable:$true] %s968_s6  ;;  %s971_s9 = int_to_ptr.hbm [resolvable:$true] %s970_s9 }
   0x7   :  { %v59_v11 = vsub.f32 %v55_v8, %v58_v9 }
   0x9   :  { %v61_v13 = vsub.f32 %v60_v12, %v59_v11 }
   0xa   :  { %1066 = vset.pattern.permute.xlu0 %v1130_v3  ;;  %1068 = vset.pattern.permute.xlu1 %v1129_v2 }
   0xb   :  { %96 = vperm.xlu0 %1066, %v1170_v0   ;;  %121 = vperm.xlu1 %1068, %v1175_v1   ;;  %v62_v14 = vadd.f32 1e-08, %v61_v13  ;;  %v166_v48 = vperm.slane %v61_v13, 0  ;;  %v167_v49 = vperm.slane %v61_v13, 1 }
   0xd   :  { %1070 = vset.pattern.permute.xlu2 %v1130_v3  ;;  %1097 = vrcp.f32 %v62_v14  ;;  %vm68_vm0 = vweird.f32 %v62_v14  ;;  %v74_v22 = vand.u32 2147483648, %v62_v14  ;;  %v72_v25 = vand.u32 2147483647, %v62_v14 }
   0xe   :  { %86 = vperm.xlu2 %1070, %v1183_v5  }
   0xf   :  { %v75_v26 = vor.u32 1.1754944e-38, %v74_v22  ;;  %vm73_vm3 = vcmp.eq.f32.partialorder %v72_v25, 8.507059e+37 }
  0x13   :  { %117 = vperm.xlu1 %1068, %v1183_v5   ;;  %81 = vperm.xlu0 %1066, %v1191_v6   ;;  %v1098_v15 = vpop.eup %1097 }
  0x14   :  { %v64_v16 = vmul.f32 %v1098_v15, %v62_v14  ;;  %vm69_vm1 = vweird.f32 %v1098_v15 }
  0x15   :  { %vm70_vm2 = vmor %vm68_vm0, %vm69_vm1 }
  0x16   :  { %1071 = vset.pattern.permute.xlu2 %v1131_v4  ;;  %v65_v18 = vsub.f32 1.0, %v64_v16 }
  0x17   :  { %158 = vperm.xlu2 %1071, %v1175_v1  }
  0x18   :  { %v66_v19 = vmul.f32 %v1098_v15, %v65_v18 }
  0x1a   :  { %v67_v24 = vadd.f32 %v1098_v15, %v66_v19 }
  0x1b   :  { %113 = vperm.xlu1 %1068, %v1191_v6   ;;  %1073 = vset.pattern.permute.xlu0 %v1132_v7 }
  0x1c   :  { %195 = vperm.xlu0 %1073, %v1175_v1   ;;  %v71_v27 = vsel %vm70_vm2, %v1098_v15, %v67_v24 }
  0x1d   :  { %v76_v29 = vsel %vm73_vm3, %v75_v26, %v71_v27 }
  0x1e   :  { %v77_v32 = vmul.f32 %v76_v29, %v60_v12 }
  0x1f   :  { %154 = vperm.xlu2 %1071, %v1183_v5  }
  0x20   :  { %v78_v33 = vsub.f32 1.0, %v77_v32  ;;  %v100_v39 = vperm.slane %v77_v32, 0  ;;  %v101_v40 = vperm.slane %v77_v32, 1 }
  0x22   :  { %v129_v35 = vperm.slane %v78_v33, 0  ;;  %v130_v36 = vperm.slane %v78_v33, 1 }
  0x23   :  { %1072 = vset.pattern.permute.xlu1 %v1132_v7 }
  0x24   :  { %199 = vperm.xlu1 %1072, %v1170_v0   ;;  %1077 = vset.pattern.permute.xlu0 %v1133_v37 }
  0x25   :  { %223 = vperm.xlu0 %1077, %v1183_v5  }
  0x27   :  { %150 = vperm.xlu2 %1071, %v1191_v6  }
  0x2c   :  { %191 = vperm.xlu1 %1072, %v1183_v5  }
  0x2f   :  { %1074 = vset.pattern.permute.xlu2 %v1132_v7 }
  0x30   :  { %187 = vperm.xlu2 %1074, %v1191_v6  }
  0x34   :  { %1075 = vset.pattern.permute.xlu1 %v1133_v37 }
  0x35   :  { %231 = vperm.xlu1 %1075, %v1170_v0  }
  0x38   :  { %1076 = vset.pattern.permute.xlu2 %v1133_v37 }
  0x39   :  { %227 = vperm.xlu2 %1076, %v1175_v1  }
  0x3d   :  { %219 = vperm.xlu1 %1075, %v1191_v6  }
  0x5f   :  { %v163_v17 = vpop.permute.xlu2 %162 }
  0x60   :  { %v176_v59 = vmul.f32 %v166_v48, %v163_v17  ;;  %v177_v60 = vmul.f32 %v167_v49, %v163_v17 }
  0x68   :  { %v87_v23 = vpop.permute.xlu2 %86 }
  0x69   :  { %v106_v13 = vmul.f32 %v100_v39, %v87_v23  ;;  %v107_v14 = vmul.f32 %v101_v40, %v87_v23 }
  0x71   :  { %v159_v31 = vpop.permute.xlu2 %158 }
  0x72   :  { %v174_v53 = vmul.f32 %v166_v48, %v159_v31  ;;  %v175_v54 = vmul.f32 %v167_v49, %v159_v31 }
  0x74   :  { %v92_v20 = vpop.permute.xlu1 %91  ;;  %v126_v21 = vpop.permute.xlu0 %125 }
  0x75   :  { %v139_v42 = vmul.f32 %v129_v35, %v126_v21  ;;  %v140_v43 = vmul.f32 %v130_v36, %v126_v21  ;;  %v108_v51 = vmul.f32 %v100_v39, %v92_v20  ;;  %v109_v52 = vmul.f32 %v101_v40, %v92_v20 }
  0x79   :  { %v155_v41 = vpop.permute.xlu2 %154 }
  0x7a   :  { %v172_v22 = vmul.f32 %v166_v48, %v155_v41  ;;  %v173_v24 = vmul.f32 %v167_v49, %v155_v41 }
  0x7d   :  { %v122_v28 = vpop.permute.xlu1 %121  ;;  %v97_v30 = vpop.permute.xlu0 %96 }
  0x7e   :  { %v110_v44 = vmul.f32 %v100_v39, %v97_v30  ;;  %v111_v45 = vmul.f32 %v101_v40, %v97_v30  ;;  %v137_v46 = vmul.f32 %v129_v35, %v122_v28  ;;  %v138_v47 = vmul.f32 %v130_v36, %v122_v28 }
  0x80   :  { %v147_v55 = vadd.f32 %v139_v42, %v110_v44  ;;  %v148_v56 = vadd.f32 %v140_v43, %v111_v45  ;;  %v145_v57 = vadd.f32 %v137_v46, %v108_v51  ;;  %v146_v58 = vadd.f32 %v138_v47, %v109_v52  ;;  %v22_v46 = vld [vmem:[%s1557_s0] sm:$0xff]  ;;  %v25_v47 = vld [vmem:[%s1557_s0 + $0x18] sm:$0xff] }
  0x81   :  { %v151_v2 = vpop.permute.xlu2 %150  ;;  %v1134_v52 = vmov 10  }
  0x82   :  { %v182_v3 = vadd.f32 %v174_v53, %v145_v57  ;;  %v183_v4 = vadd.f32 %v175_v54, %v146_v58  ;;  %v185_v7 = vadd.f32 %v177_v60, %v148_v56  ;;  %v184_v8 = vadd.f32 %v176_v59, %v147_v55  ;;  %1079 = vset.pattern.permute.xlu1 %v1134_v52 }
  0x83   :  { %v170_v25 = vmul.f32 %v166_v48, %v151_v2  ;;  %v171_v26 = vmul.f32 %v167_v49, %v151_v2  ;;  %v23_v48 = vld [vmem:[%s1557_s0 + $0x8] sm:$0xff]  ;;  %v24_v49 = vld [vmem:[%s1557_s0 + $0x10] sm:$0xff]  ;;  %1078 = vset.pattern.permute.xlu2 %v1134_v52  ;;  %315 = vperm.xlu1 %1079, %v1175_v1   ;;  %v463_v52 = vld [vmem:[%s1559_s2 + $0x58] sm:$0xff] }
  0x84   :  { %319 = vperm.xlu2 %1078, %v1170_v0  }
  0x85   :  { %v118_v34 = vpop.permute.xlu1 %117  ;;  %v82_v38 = vpop.permute.xlu0 %81 }
  0x86   :  { %v135_v9 = vmul.f32 %v129_v35, %v118_v34  ;;  %v136_v10 = vmul.f32 %v130_v36, %v118_v34  ;;  %v104_v11 = vmul.f32 %v100_v39, %v82_v38  ;;  %v105_v12 = vmul.f32 %v101_v40, %v82_v38 }
  0x88   :  { %v143_v27 = vadd.f32 %v135_v9, %v106_v13  ;;  %v144_v28 = vadd.f32 %v136_v10, %v107_v14  ;;  %v1135_v10 = vmov 5   ;;  %v31_v13 = vld [vmem:[%s1557_s0 + $0x48] sm:$0xff]  ;;  %v32_v14 = vld [vmem:[%s1557_s0 + $0x50] sm:$0xff] }
  0x89   :  { %1080 = vset.pattern.permute.xlu0 %v1135_v10 }
  0x8a   :  { %v188_v34 = vpop.permute.xlu2 %187  ;;  %385 = vperm.xlu0 %1080, %v1170_v0  }
  0x8b   :  { %307 = vperm.xlu1 %1079, %v1191_v6  }
  0x8c   :  { %311 = vperm.xlu2 %1078, %v1183_v5  }
  0x8d   :  { %v114_v50 = vpop.permute.xlu1 %113 }
  0x8e   :  { %v133_v61 = vmul.f32 %v129_v35, %v114_v50  ;;  %v134_v62 = vmul.f32 %v130_v36, %v114_v50  ;;  %v196_v63 = vpop.permute.xlu0 %195  ;;  %v180_v35 = vadd.f32 %v172_v22, %v143_v27  ;;  %v181_v36 = vadd.f32 %v173_v24, %v144_v28  ;;  %v1095_v24 = vld [vmem:[%s1559_s2] ss:$0 sm:$0xff] }
  0x8f   :  { %v206_v15 = vadd.f32 %v196_v63, %v182_v3  ;;  %v207_v16 = vadd.f32 %v196_v63, %v183_v4 }
  0x90   :  { %v141_v19 = vadd.f32 %v133_v61, %v104_v11  ;;  %v142_v20 = vadd.f32 %v134_v62, %v105_v12 }
  0x91   :  { %v214_v23 = vmax.f32 %v206_v15, 0.0  ;;  %v215_v33 = vmax.f32 %v207_v16, 0.0  ;;  %v33_v15 = vld [vmem:[%s1557_s0 + $0x58] sm:$0xff] }
  0x92   :  { %v178_v31 = vadd.f32 %v170_v25, %v141_v19  ;;  %v179_v32 = vadd.f32 %v171_v26, %v142_v20 }
  0x93   :  { %v228_v60 = vpop.permute.xlu2 %227  ;;  %1082 = vset.pattern.permute.xlu1 %v1135_v10 }
  0x94   :  { %v202_v38 = vadd.f32 %v188_v34, %v178_v31  ;;  %v203_v39 = vadd.f32 %v188_v34, %v179_v32  ;;  %377 = vperm.xlu1 %1082, %v1183_v5   ;;  %1081 = vset.pattern.permute.xlu2 %v1135_v10 }
  0x95   :  { %381 = vperm.xlu2 %1081, %v1175_v1  }
  0x96   :  { %v200_v18 = vpop.permute.xlu1 %199  ;;  %v210_v44 = vmax.f32 %v202_v38, 0.0  ;;  %v211_v45 = vmax.f32 %v203_v39, 0.0 }
  0x97   :  { %v209_v17 = vadd.f32 %v200_v18, %v185_v7  ;;  %v208_v21 = vadd.f32 %v200_v18, %v184_v8  ;;  %v224_v58 = vpop.permute.xlu0 %223  ;;  %v30_v7 = vld [vmem:[%s1557_s0 + $0x40] sm:$0xff] }
  0x99   :  { %v216_v29 = vmax.f32 %v208_v21, 0.0  ;;  %v217_v30 = vmax.f32 %v209_v17, 0.0  ;;  %v1136_v21 = vmov 6  }
  0x9a   :  { %1083 = vset.pattern.permute.xlu0 %v1136_v21 }
  0x9b   :  { %259 = vmatpush.msra.mxu0 %v216_v29  ;;  %288 = vmatpush.msra.mxu1 %v217_v30 }
  0x9c   :  { %1030 = vmatpush.msra.mxu3 %v217_v30  ;;  %1084 = vset.pattern.permute.xlu1 %v1136_v21 }
  0x9d   :  { %260 = vmatpush.msra.mxu0 %v214_v23  ;;  %289 = vmatpush.msra.mxu1 %v215_v33 }
  0x9e   :  { %1031 = vmatpush.msra.mxu3 %v215_v33  ;;  %v192_v37 = vpop.permute.xlu1 %191  ;;  %373 = vperm.xlu2 %1081, %v1191_v6  }
  0x9f   :  { %v204_v40 = vadd.f32 %v192_v37, %v180_v35  ;;  %v205_v41 = vadd.f32 %v192_v37, %v181_v36  ;;  %401 = vperm.xlu1 %1084, %v1183_v5   ;;  %397 = vperm.xlu0 %1083, %v1191_v6  }
  0xa1   :  { %v212_v42 = vmax.f32 %v204_v40, 0.0  ;;  %v213_v43 = vmax.f32 %v205_v41, 0.0 }
  0xa3   :  { %261 = vmatpush.msra.mxu0 %v212_v42  ;;  %290 = vmatpush.msra.mxu1 %v213_v43  ;;  %v468_v42 = vld [vmem:[%s1559_s2 + $0x80] sm:$0xff] }
  0xa4   :  { %1032 = vmatpush.msra.mxu3 %v213_v43  ;;  %v467_v43 = vld [vmem:[%s1559_s2 + $0x78] sm:$0xff] }
  0xa5   :  { %262 = vmatpush.msra.mxu0 %v210_v44  ;;  %291 = vmatpush.msra.mxu1 %v211_v45 }
  0xa6   :  { %1033 = vmatpush.msra.mxu3 %v211_v45  ;;  %980 = vmatmul.msk.f32.vlgmr.msra.gmra.mxu0 %vm234_vm4, %v22_v46 }
  0xa7   :  { %984 = vmatmul.msk.f32.vlgmr.msra.gmra.mxu1 %vm234_vm4, %v22_v46  ;;  %987 = vmatmul.msk.f32.vlgmr.msra.gmra.mxu3 %vm234_vm4, %v25_v47  ;;  %v232_v53 = vpop.permute.xlu1 %231  ;;  %v466_v46 = vld [vmem:[%s1559_s2 + $0x70] sm:$0xff] }
  0xa8   :  { %1085 = vset.pattern.permute.xlu2 %v1136_v21  ;;  %409 = vperm.xlu1 %1084, %v1170_v0   ;;  %v1371_v21 = vld [vmem:[%s1559_s2 + $0x108] ss:$0 sm:$0xff] }
  0xa9   :  { %405 = vperm.xlu2 %1085, %v1175_v1   ;;  %471 = vmatpush.msrb.mxu0 %v468_v42 }
  0xab   :  { %472 = vmatpush.msrb.mxu0 %v467_v43 }
  0xad   :  { %473 = vmatpush.msrb.mxu0 %v466_v46 }
  0xae   :  { %981 = vmatmul.msk.f32.gmra.mxu0 %vm234_vm4, %v23_v48 }
  0xaf   :  { %985 = vmatmul.msk.f32.gmra.mxu1 %vm234_vm4, %v23_v48  ;;  %v220_v2 = vpop.permute.xlu1 %219  ;;  %v465_v48 = vld [vmem:[%s1559_s2 + $0x68] sm:$0xff] }
  0xb0   :  { %474 = vmatpush.msrb.mxu0 %v465_v48 }
  0xb6   :  { %982 = vmatmul.msk.f32.gmra.mxu0 %vm234_vm4, %v24_v49 }
  0xb7   :  { %986 = vmatmul.msk.f32.gmra.mxu1 %vm234_vm4, %v24_v49 }
  0xbe   :  { %983 = vmatmul.msk.f32.gmra.mxu0 %vm234_vm4, %v25_v47 }
  0xde   :  { %v320_v16 = vpop.permute.xlu2 %319 }
  0xdf   :  { %v326_v29 = vmul.f32 %v1095_v24, %v320_v16 }
  0xe6   :  { %v312_v19 = vpop.permute.xlu2 %311 }
  0xe7   :  { %v324_v28 = vmul.f32 %v1095_v24, %v312_v19 }
  0xef   :  { %v1266_v25 = vpop.permute.xlu2 %381 }
  0xf5   :  { %v316_v20 = vpop.permute.xlu1 %315 }
  0xf6   :  { %v325_v27 = vmul.f32 %v1095_v24, %v316_v20 }
  0xf8   :  { %v1276_v39 = vpop.permute.xlu2 %373 }
  0xfc   :  { %v1269_v23 = vpop.permute.xlu0 %385 }
  0xfd   :  { %v308_v26 = vpop.permute.xlu1 %307 }
  0xfe   :  { %v323_v30 = vmul.f32 %v1095_v24, %v308_v26 }
 0x106   :  { %v1272_v35 = vpop.permute.xlu1 %377 }
 0x123   :  { %v264_v50 = vpop.f32.mrf.mxu0 }
 0x124   :  { %v293_v51 = vpop.f32.mrf.mxu1  ;;  %v265_v12 = vadd.f32 %v264_v50, %v220_v2  ;;  %v1295_v50 = vld [vmem:[%s1557_s0 + $0x60] sm:$0xff] }
 0x125   :  { %v294_v3 = vadd.f32 %v293_v51, %v220_v2  ;;  %v464_v51 = vld [vmem:[%s1559_s2 + $0x60] sm:$0xff]  ;;  %v454_v2 = vld [vmem:[%s1559_s2 + $0x10] sm:$0xff] }
 0x126   :  { %475 = vmatpush.msrb.mxu0 %v464_v51 }
 0x128   :  { %476 = vmatpush.msrb.mxu0 %v463_v52  ;;  %v626_v52 = vld [vmem:[%s1559_s2 + $0x100] sm:$0xff] }
 0x12a   :  { %v302_v54 = vpop.f32.mrf.mxu3 }
 0x12b   :  { %v267_v55 = vpop.f32.mrf.mxu0  ;;  %v303_v56 = vadd.f32 %v302_v54, %v232_v53  ;;  %v461_v54 = vld [vmem:[%s1559_s2 + $0x48] sm:$0xff] }
 0x12c   :  { %v296_v57 = vpop.f32.mrf.mxu1  ;;  %v268_v11 = vadd.f32 %v267_v55, %v224_v58  ;;  %v1314_v55 = vld [vmem:[%s1557_s0 + $0x68] sm:$0xff] }
 0x12d   :  { %512 = vmatpush.msrb.mxu1 %v303_v56  ;;  %v297_v62 = vadd.f32 %v296_v57, %v224_v58  ;;  %v460_v56 = vld [vmem:[%s1559_s2 + $0x40] sm:$0xff]  ;;  %v459_v57 = vld [vmem:[%s1559_s2 + $0x38] sm:$0xff]  ;;  %v458_v58 = vld [vmem:[%s1559_s2 + $0x30] sm:$0xff] }
 0x133   :  { %v270_v59 = vpop.f32.mrf.mxu0 }
 0x134   :  { %v299_v61 = vpop.f32.mrf.mxu1  ;;  %v271_v9 = vadd.f32 %v270_v59, %v228_v60  ;;  %v457_v59 = vld [vmem:[%s1559_s2 + $0x28] sm:$0xff] }
 0x135   :  { %v300_v63 = vadd.f32 %v299_v61, %v228_v60  ;;  %v1333_v60 = vld [vmem:[%s1557_s0 + $0x70] sm:$0xff]  ;;  %v456_v61 = vld [vmem:[%s1559_s2 + $0x20] sm:$0xff] }
 0x137   :  { %513 = vmatpush.msrb.mxu1 %v300_v63  ;;  %v1346_v63 = vld [vmem:[%s1557_s0 + $0x78] sm:$0xff] }
 0x139   :  { %514 = vmatpush.msrb.mxu1 %v297_v62  ;;  %v455_v62 = vld [vmem:[%s1559_s2 + $0x18] sm:$0xff] }
 0x13b   :  { %v273_v4 = vpop.f32.mrf.mxu0  ;;  %515 = vmatpush.msrb.mxu1 %v294_v3  ;;  %v453_v3 = vld [vmem:[%s1559_s2 + $0x8] sm:$0xff] }
 0x13c   :  { %v274_v8 = vadd.f32 %v273_v4, %v232_v53  ;;  %996 = vmatmul.msk.f32.vlgmr.msrb.gmra.mxu1 %vm234_vm4, %v30_v7  ;;  %v462_v53 = vld [vmem:[%s1559_s2 + $0x50] sm:$0xff]  ;;  %v1356_v4 = vpop.permute.xlu0 %397 }
 0x13d   :  { %477 = vmatpush.msrb.mxu0 %v462_v53  ;;  %v625_v53 = vld [vmem:[%s1559_s2 + $0xf8] sm:$0xff] }
 0x13e   :  { %351 = vmatpush.msra.mxu2 %v274_v8 }
 0x13f   :  { %478 = vmatpush.msrb.mxu0 %v461_v54 }
 0x140   :  { %352 = vmatpush.msra.mxu2 %v271_v9  ;;  %v1359_v9 = vpop.permute.xlu1 %401 }
 0x141   :  { %479 = vmatpush.msrb.mxu0 %v460_v56 }
 0x142   :  { %353 = vmatpush.msra.mxu2 %v268_v11 }
 0x143   :  { %480 = vmatpush.msrb.mxu0 %v459_v57 }
 0x144   :  { %354 = vmatpush.msra.mxu2 %v265_v12  ;;  %997 = vmatmul.msk.f32.gmra.mxu1 %vm234_vm4, %v31_v13  ;;  %v1362_v12 = vpop.permute.xlu2 %405 }
 0x145   :  { %988 = vmatmul.msk.f32.vlgmr.msra.gmra.mxu2 %vm234_vm4, %v30_v7  ;;  %481 = vmatpush.msrb.mxu0 %v458_v58  ;;  %v621_v58 = vld [vmem:[%s1559_s2 + $0xd8] sm:$0xff] }
 0x147   :  { %482 = vmatpush.msrb.mxu0 %v457_v59  ;;  %v620_v59 = vld [vmem:[%s1559_s2 + $0xd0] sm:$0xff] }
 0x149   :  { %483 = vmatpush.msrb.mxu0 %v456_v61  ;;  %v619_v61 = vld [vmem:[%s1559_s2 + $0xc8] sm:$0xff] }
 0x14b   :  { %484 = vmatpush.msrb.mxu0 %v455_v62  ;;  %v617_v62 = vld [vmem:[%s1559_s2 + $0xb8] sm:$0xff] }
 0x14c   :  { %998 = vmatmul.msk.f32.gmra.mxu1 %vm234_vm4, %v32_v14 }
 0x14d   :  { %989 = vmatmul.msk.f32.gmra.mxu2 %vm234_vm4, %v31_v13  ;;  %485 = vmatpush.msrb.mxu0 %v454_v2  ;;  %v616_v2 = vld [vmem:[%s1559_s2 + $0xb0] sm:$0xff] }
 0x14f   :  { %486 = vmatpush.msrb.mxu0 %v453_v3  ;;  %v615_v3 = vld [vmem:[%s1559_s2 + $0xa8] sm:$0xff] }
 0x151   :  { %627 = vmatpush.msra.mxu0 %v626_v52 }
 0x153   :  { %628 = vmatpush.msra.mxu0 %v625_v53 }
 0x154   :  { %999 = vmatmul.msk.f32.gmra.mxu1 %vm234_vm4, %v33_v15 }
 0x155   :  { %990 = vmatmul.msk.f32.gmra.mxu2 %vm234_vm4, %v32_v14 }
 0x15d   :  { %991 = vmatmul.msk.f32.gmra.mxu2 %vm234_vm4, %v33_v15  ;;  %v1365_v15 = vpop.permute.xlu1 %409 }
 0x1c8   :  { %v356_v18 = vpop.f32.mrf.mxu2 }
 0x1c9   :  { %v368_v36 = vadd.f32 %v356_v18, %v323_v30  ;;  %v27_v30 = vld [vmem:[%s1557_s0 + $0x28] sm:$0xff] }
 0x1cb   :  { %v388_v44 = vadd.f32 %v1276_v39, %v368_v36 }
 0x1cd   :  { %v392_v49 = vmax.f32 %v388_v44, 0.0 }
 0x1d0   :  { %v359_v17 = vpop.f32.mrf.mxu2 }
 0x1d1   :  { %v369_v33 = vadd.f32 %v359_v17, %v324_v28 }
 0x1d3   :  { %v389_v40 = vadd.f32 %v1272_v35, %v369_v33  ;;  %v517_v33 = vpop.f32.mrf.mxu1 }
 0x1d5   :  { %v393_v47 = vmax.f32 %v389_v40, 0.0 }
 0x1d8   :  { %v362_v22 = vpop.f32.mrf.mxu2 }
 0x1d9   :  { %v370_v31 = vadd.f32 %v362_v22, %v325_v27 }
 0x1db   :  { %v390_v38 = vadd.f32 %v1266_v25, %v370_v31  ;;  %v28_v31 = vld [vmem:[%s1557_s0 + $0x30] sm:$0xff]  ;;  %v520_v36 = vpop.f32.mrf.mxu1 }
 0x1dd   :  { %v394_v45 = vmax.f32 %v390_v38, 0.0 }
 0x1e0   :  { %v365_v32 = vpop.f32.mrf.mxu2 }
 0x1e1   :  { %v371_v34 = vadd.f32 %v365_v32, %v326_v29  ;;  %v26_v29 = vld [vmem:[%s1557_s0 + $0x20] sm:$0xff]  ;;  %v29_v32 = vld [vmem:[%s1557_s0 + $0x38] sm:$0xff] }
 0x1e3   :  { %v391_v37 = vadd.f32 %v1269_v23, %v371_v34  ;;  %v523_v38 = vpop.f32.mrf.mxu1 }
 0x1e5   :  { %v395_v41 = vmax.f32 %v391_v37, 0.0 }
 0x1e7   :  { %436 = vmatpush.msrb.mxu3 %v395_v41 }
 0x1e9   :  { %437 = vmatpush.msrb.mxu3 %v394_v45 }
 0x1eb   :  { %438 = vmatpush.msrb.mxu3 %v393_v47  ;;  %v526_v41 = vpop.f32.mrf.mxu1 }
 0x1ed   :  { %439 = vmatpush.msrb.mxu3 %v392_v49 }
 0x1ee   :  { %992 = vmatmul.msk.f32.vlgmr.msrb.gmra.mxu3 %vm234_vm4, %v1295_v50 }
 0x1f6   :  { %993 = vmatmul.msk.f32.gmra.mxu3 %vm234_vm4, %v1314_v55 }
 0x1fe   :  { %994 = vmatmul.msk.f32.gmra.mxu3 %vm234_vm4, %v1333_v60 }
 0x206   :  { %995 = vmatmul.msk.f32.gmra.mxu3 %vm234_vm4, %v1346_v63 }
 0x271   :  { %v441_v7 = vpop.f32.mrf.mxu3 }
 0x272   :  { %v442_v8 = vadd.f32 %v441_v7, %v1356_v4  ;;  %v613_v7 = vld [vmem:[%s1559_s2 + $0x98] sm:$0xff] }
 0x274   :  { %487 = vmatmul.f32.vlgmr.msrb.gmra.mxu0 %v442_v8 }
 0x279   :  { %v444_v10 = vpop.f32.mrf.mxu3 }
 0x27a   :  { %v445_v11 = vadd.f32 %v444_v10, %v1359_v9 }
 0x27c   :  { %490 = vmatmul.f32.gmra.mxu0 %v445_v11 }
 0x281   :  { %v447_v13 = vpop.f32.mrf.mxu3 }
 0x282   :  { %v448_v14 = vadd.f32 %v447_v13, %v1362_v12 }
 0x284   :  { %493 = vmatmul.f32.gmra.mxu0 %v448_v14 }
 0x289   :  { %v450_v16 = vpop.f32.mrf.mxu3 }
 0x28a   :  { %v451_v18 = vadd.f32 %v450_v16, %v1365_v15 }
 0x28c   :  { %496 = vmatmul.f32.gmra.mxu0 %v451_v18  ;;  %680 = vmatpush.msra.mxu1 %v451_v18 }
 0x28e   :  { %681 = vmatpush.msra.mxu1 %v448_v14 }
 0x290   :  { %682 = vmatpush.msra.mxu1 %v445_v11 }
 0x292   :  { %683 = vmatpush.msra.mxu1 %v442_v8  ;;  %v612_v8 = vld [vmem:[%s1559_s2 + $0x90] sm:$0xff] }
 0x2f1   :  { %v488_v19 = vpop.f32.mrf.mxu0 }
 0x2f2   :  { %v489_v28 = vadd.f32 %v1371_v21, %v488_v19 }
 0x2f9   :  { %v491_v20 = vpop.f32.mrf.mxu0 }
 0x2fa   :  { %v492_v27 = vadd.f32 %v1371_v21, %v491_v20 }
 0x301   :  { %v494_v17 = vpop.f32.mrf.mxu0 }
 0x302   :  { %v495_v26 = vadd.f32 %v1371_v21, %v494_v17 }
 0x309   :  { %v497_v22 = vpop.f32.mrf.mxu0 }
 0x30a   :  { %v498_v24 = vadd.f32 %v1371_v21, %v497_v22 }
 0x30c   :  { %553 = vmatpush.msrb.mxu2 %v498_v24  ;;  %v43_v24 = vld [vmem:[%s1557_s0 + $0xa8] sm:$0xff] }
 0x30e   :  { %554 = vmatpush.msrb.mxu2 %v495_v26 }
 0x310   :  { %555 = vmatpush.msrb.mxu2 %v492_v27  ;;  %v45_v27 = vld [vmem:[%s1557_s0 + $0xb8] sm:$0xff] }
 0x312   :  { %556 = vmatpush.msrb.mxu2 %v489_v28  ;;  %v1137_v28 = vmov 7  }
 0x313   :  { %1000 = vmatmul.msk.f32.vlgmr.msrb.gmra.mxu2 %vm234_vm4, %v26_v29  ;;  %1088 = vset.pattern.permute.xlu1 %v1137_v28 }
 0x314   :  { %1034 = vmatpush.msra.mxu2 %v626_v52  ;;  %743 = vperm.xlu1 %1088, %v1183_v5  }
 0x315   :  { %1086 = vset.pattern.permute.xlu2 %v1137_v28  ;;  %1087 = vset.pattern.permute.xlu0 %v1137_v28 }
 0x316   :  { %1035 = vmatpush.msra.mxu2 %v625_v53  ;;  %751 = vperm.xlu2 %1086, %v1170_v0  }
 0x317   :  { %747 = vperm.xlu0 %1087, %v1175_v1  }
 0x31b   :  { %1001 = vmatmul.msk.f32.gmra.mxu2 %vm234_vm4, %v27_v30  ;;  %v38_v30 = vld [vmem:[%s1557_s0 + $0x80] sm:$0xff] }
 0x31e   :  { %739 = vperm.xlu2 %1086, %v1191_v6  }
 0x323   :  { %1002 = vmatmul.msk.f32.gmra.mxu2 %vm234_vm4, %v28_v31  ;;  %v39_v31 = vld [vmem:[%s1557_s0 + $0x88] sm:$0xff] }
 0x32b   :  { %1003 = vmatmul.msk.f32.gmra.mxu2 %vm234_vm4, %v29_v32  ;;  %v40_v32 = vld [vmem:[%s1557_s0 + $0x90] sm:$0xff] }
 0x396   :  { %v558_v34 = vpop.f32.mrf.mxu2 }
 0x397   :  { %v559_v46 = vadd.f32 %v558_v34, %v517_v33  ;;  %v41_v33 = vld [vmem:[%s1557_s0 + $0x98] sm:$0xff] }
 0x399   :  { %v570_v54 = vadd.f32 %v559_v46, %v1276_v39  ;;  %v622_v39 = vld [vmem:[%s1559_s2 + $0xe0] sm:$0xff]  ;;  %v748_v46 = vpop.permute.xlu0 %747 }
 0x39b   :  { %v574_v57 = vmax.f32 %v570_v54, 0.0 }
 0x39e   :  { %v561_v37 = vpop.f32.mrf.mxu2 }
 0x39f   :  { %v562_v44 = vadd.f32 %v561_v37, %v520_v36 }
 0x3a1   :  { %v571_v49 = vadd.f32 %v562_v44, %v1272_v35  ;;  %v623_v35 = vld [vmem:[%s1559_s2 + $0xe8] sm:$0xff] }
 0x3a6   :  { %v564_v40 = vpop.f32.mrf.mxu2 }
 0x3a7   :  { %v565_v42 = vadd.f32 %v564_v40, %v523_v38  ;;  %v1138_v38 = vmov 8  }
 0x3a8   :  { %1089 = vset.pattern.permute.xlu1 %v1138_v38  ;;  %1091 = vset.pattern.permute.xlu0 %v1138_v38 }
 0x3a9   :  { %v572_v47 = vadd.f32 %v565_v42, %v1266_v25  ;;  %v624_v25 = vld [vmem:[%s1559_s2 + $0xf0] sm:$0xff]  ;;  %775 = vperm.xlu1 %1089, %v1170_v0   ;;  %767 = vperm.xlu0 %1091, %v1183_v5  }
 0x3aa   :  { %629 = vmatpush.msra.mxu0 %v624_v25  ;;  %1036 = vmatpush.msra.mxu2 %v624_v25 }
 0x3ab   :  { %v576_v56 = vmax.f32 %v572_v47, 0.0  ;;  %1090 = vset.pattern.permute.xlu2 %v1138_v38  ;;  %v54_v38 = vld [vmem:[%s1557_s0 + $0x100] sm:$0xff] }
 0x3ac   :  { %630 = vmatpush.msra.mxu0 %v623_v35  ;;  %1037 = vmatpush.msra.mxu2 %v623_v35  ;;  %v46_v35 = vld [vmem:[%s1557_s0 + $0xc0] sm:$0xff] }
 0x3ad   :  { %771 = vperm.xlu2 %1090, %v1175_v1  }
 0x3ae   :  { %v567_v43 = vpop.f32.mrf.mxu2  ;;  %631 = vmatpush.msra.mxu0 %v622_v39  ;;  %1038 = vmatpush.msra.mxu2 %v622_v39  ;;  %v48_v39 = vld [vmem:[%s1557_s0 + $0xd0] sm:$0xff] }
 0x3af   :  { %v568_v45 = vadd.f32 %v567_v43, %v526_v41  ;;  %v752_v43 = vpop.permute.xlu2 %751 }
 0x3b0   :  { %632 = vmatpush.msra.mxu0 %v621_v58  ;;  %1039 = vmatpush.msra.mxu2 %v621_v58  ;;  %v49_v58 = vld [vmem:[%s1557_s0 + $0xd8] sm:$0xff] }
 0x3b1   :  { %v573_v48 = vadd.f32 %v568_v45, %v1269_v23  ;;  %v575_v23 = vmax.f32 %v571_v49, 0.0  ;;  %763 = vperm.xlu1 %1089, %v1191_v6  }
 0x3b2   :  { %633 = vmatpush.msra.mxu0 %v620_v59  ;;  %1040 = vmatpush.msra.mxu2 %v620_v59  ;;  %v50_v59 = vld [vmem:[%s1557_s0 + $0xe0] sm:$0xff] }
 0x3b3   :  { %v577_v51 = vmax.f32 %v573_v48, 0.0 }
 0x3b4   :  { %634 = vmatpush.msra.mxu0 %v619_v61  ;;  %1041 = vmatpush.msra.mxu2 %v619_v61  ;;  %v51_v61 = vld [vmem:[%s1557_s0 + $0xe8] sm:$0xff] }
 0x3b5   :  { %590 = vmatpush.msra.mxu3 %v577_v51  ;;  %v744_v51 = vpop.permute.xlu1 %743 }
 0x3b7   :  { %591 = vmatpush.msra.mxu3 %v576_v56  ;;  %v740_v54 = vpop.permute.xlu2 %739 }
 0x3b9   :  { %592 = vmatpush.msra.mxu3 %v575_v23 }
 0x3bb   :  { %593 = vmatpush.msra.mxu3 %v574_v57  ;;  %v47_v57 = vld [vmem:[%s1557_s0 + $0xc8] sm:$0xff] }
 0x3bc   :  { %1004 = vmatmul.msk.f32.vlgmr.msra.gmra.mxu3 %vm234_vm4, %v1295_v50  ;;  %v618_v50 = vld [vmem:[%s1559_s2 + $0xc0] sm:$0xff] }
 0x3bd   :  { %635 = vmatpush.msra.mxu0 %v618_v50  ;;  %1042 = vmatpush.msra.mxu2 %v618_v50  ;;  %v52_v50 = vld [vmem:[%s1557_s0 + $0xf0] sm:$0xff] }
 0x3bf   :  { %636 = vmatpush.msra.mxu0 %v617_v62  ;;  %1043 = vmatpush.msra.mxu2 %v617_v62  ;;  %v53_v62 = vld [vmem:[%s1557_s0 + $0xf8] sm:$0xff] }
 0x3c1   :  { %637 = vmatpush.msra.mxu0 %v616_v2  ;;  %1044 = vmatpush.msra.mxu2 %v616_v2 }
 0x3c3   :  { %638 = vmatpush.msra.mxu0 %v615_v3  ;;  %1045 = vmatpush.msra.mxu2 %v615_v3  ;;  %v1139_v3 = vmov 9  }
 0x3c4   :  { %1005 = vmatmul.msk.f32.gmra.mxu3 %vm234_vm4, %v1314_v55  ;;  %v614_v55 = vld [vmem:[%s1559_s2 + $0xa0] sm:$0xff]  ;;  %1093 = vset.pattern.permute.xlu1 %v1139_v3 }
 0x3c5   :  { %639 = vmatpush.msra.mxu0 %v614_v55  ;;  %1046 = vmatpush.msra.mxu2 %v614_v55  ;;  %v1099_v55 = vld [vmem:[%s1558_s1 + $0x10] sm:$0xff] }
 0x3c6   :  { %1094 = vset.pattern.permute.xlu0 %v1139_v3  ;;  %828 = vperm.xlu1 %1093, %v1099_v55  }
 0x3c7   :  { %640 = vmatpush.msra.mxu0 %v613_v7  ;;  %1047 = vmatpush.msra.mxu2 %v613_v7  ;;  %v1100_v7 = vld [vmem:[%s1558_s1] sm:$0xff] }
 0x3c8   :  { %820 = vperm.xlu0 %1094, %v1100_v7   ;;  %1092 = vset.pattern.permute.xlu2 %v1139_v3 }
 0x3c9   :  { %641 = vmatpush.msra.mxu0 %v612_v8  ;;  %1048 = vmatpush.msra.mxu2 %v612_v8  ;;  %v1101_v8 = vld [vmem:[%s1558_s1 + $0x18] sm:$0xff] }
 0x3ca   :  { %832 = vperm.xlu2 %1092, %v1101_v8  }
 0x3cc   :  { %1006 = vmatmul.msk.f32.gmra.mxu3 %vm234_vm4, %v1333_v60  ;;  %v611_v60 = vld [vmem:[%s1559_s2 + $0x88] sm:$0xff] }
 0x3cd   :  { %642 = vmatpush.msra.mxu0 %v611_v60  ;;  %1049 = vmatpush.msra.mxu2 %v611_v60 }
 0x3ce   :  { %913 = vrot.lane.b32.xlu1 %v1100_v7, %s1140_s29 }
 0x3d4   :  { %1007 = vmatmul.msk.f32.gmra.mxu3 %vm234_vm4, %v1346_v63 }
 0x43f   :  { %v595_v10 = vpop.f32.mrf.mxu3 }
 0x440   :  { %v596_v63 = vadd.f32 %v595_v10, %v1356_v4  ;;  %v1102_v10 = vld [vmem:[%s1558_s1 + $0x8] sm:$0xff] }
 0x441   :  { %824 = vperm.xlu2 %1092, %v1102_v10  }
 0x442   :  { %v607_v11 = vsub.f32 %v596_v63, %v1371_v21 }
 0x444   :  { %643 = vmatmul.f32.vlgmr.msra.gmra.mxu0 %v607_v11  ;;  %v776_v11 = vpop.permute.xlu1 %775 }
 0x447   :  { %v598_v13 = vpop.f32.mrf.mxu3 }
 0x448   :  { %v599_v14 = vadd.f32 %v598_v13, %v1359_v9  ;;  %v42_v9 = vld [vmem:[%s1557_s0 + $0xa0] sm:$0xff]  ;;  %v772_v13 = vpop.permute.xlu2 %771 }
 0x449   :  { %1008 = vmatmul.msk.f32.vlgmr.msra.gmra.mxu1 %vm234_vm4, %v42_v9 }
 0x44a   :  { %v608_v16 = vsub.f32 %v599_v14, %v1371_v21 }
 0x44c   :  { %646 = vmatmul.f32.gmra.mxu0 %v608_v16 }
 0x44f   :  { %v601_v18 = vpop.f32.mrf.mxu3 }
 0x450   :  { %v602_v19 = vadd.f32 %v601_v18, %v1362_v12  ;;  %v768_v18 = vpop.permute.xlu0 %767 }
 0x451   :  { %1009 = vmatmul.msk.f32.gmra.mxu1 %vm234_vm4, %v43_v24 }
 0x452   :  { %v609_v20 = vsub.f32 %v602_v19, %v1371_v21 }
 0x454   :  { %649 = vmatmul.f32.gmra.mxu0 %v609_v20  ;;  %v764_v20 = vpop.permute.xlu1 %763 }
 0x457   :  { %v604_v17 = vpop.f32.mrf.mxu3 }
 0x458   :  { %v605_v22 = vadd.f32 %v604_v17, %v1365_v15 }
 0x45a   :  { %v610_v4 = vsub.f32 %v605_v22, %v1371_v21  ;;  %888 = vmatpush.msrb.mxu1 %v605_v22  ;;  %v44_v21 = vld [vmem:[%s1557_s0 + $0xb0] sm:$0xff] }
 0x45b   :  { %1010 = vmatmul.msk.f32.gmra.mxu1 %vm234_vm4, %v44_v21 }
 0x45c   :  { %652 = vmatmul.f32.vlgmr.msra.gmra.mxu2 %v610_v4  ;;  %889 = vmatpush.msrb.mxu1 %v602_v19 }
 0x45e   :  { %890 = vmatpush.msrb.mxu1 %v599_v14 }
 0x460   :  { %891 = vmatpush.msrb.mxu1 %v596_v63 }
 0x463   :  { %1011 = vmatmul.msk.f32.gmra.mxu1 %vm234_vm4, %v45_v27 }
 0x46b   :  { %1024 = vmatmul.msk.f32.vlgmr.msrb.gmra.mxu1 %vm234_vm4, %v50_v59 }
 0x473   :  { %1025 = vmatmul.msk.f32.gmra.mxu1 %vm234_vm4, %v51_v61 }
 0x47b   :  { %1026 = vmatmul.msk.f32.gmra.mxu1 %vm234_vm4, %v52_v50 }
 0x483   :  { %1027 = vmatmul.msk.f32.gmra.mxu1 %vm234_vm4, %v53_v62 }
 0x4c1   :  { %v644_v12 = vpop.f32.mrf.mxu0 }
 0x4c6   :  { %v685_v34 = vpop.f32.mrf.mxu1 }
 0x4c9   :  { %v647_v15 = vpop.f32.mrf.mxu0 }
 0x4ce   :  { %v688_v37 = vpop.f32.mrf.mxu1 }
 0x4d1   :  { %v650_v29 = vpop.f32.mrf.mxu0 }
 0x4d8   :  { %v691_v41 = vpop.f32.mrf.mxu1 }
 0x4df   :  { %v653_v26 = vpop.f32.mrf.mxu2 }
 0x4e0   :  { %721 = vmatpush.msrb.mxu2 %v653_v26  ;;  %v694_v44 = vpop.f32.mrf.mxu1 }
 0x4e2   :  { %722 = vmatpush.msrb.mxu2 %v650_v29 }
 0x4e4   :  { %723 = vmatpush.msrb.mxu2 %v647_v15  ;;  %v829_v15 = vpop.permute.xlu1 %828 }
 0x4e6   :  { %724 = vmatpush.msrb.mxu2 %v644_v12  ;;  %v833_v12 = vpop.permute.xlu2 %832 }
 0x4e7   :  { %1012 = vmatmul.msk.f32.vlgmr.msrb.gmra.mxu2 %vm234_vm4, %v38_v30 }
 0x4e8   :  { %v893_v4 = vpop.f32.mrf.mxu1 }
 0x4ee   :  { %v825_v21 = vpop.permute.xlu2 %824 }
 0x4ef   :  { %1013 = vmatmul.msk.f32.gmra.mxu2 %vm234_vm4, %v39_v31 }
 0x4f0   :  { %v896_v9 = vpop.f32.mrf.mxu1 }
 0x4f1   :  { %v897_v29 = vadd.f32 %v896_v9, %v825_v21 }
 0x4f7   :  { %1014 = vmatmul.msk.f32.gmra.mxu2 %vm234_vm4, %v40_v32  ;;  %v908_v32 = vmax.f32 %v897_v29, 0.0 }
 0x4f8   :  { %v899_v24 = vpop.f32.mrf.mxu1 }
 0x4f9   :  { %v900_v26 = vadd.f32 %v899_v24, %v829_v15 }
 0x4fb   :  { %v910_v31 = vmax.f32 %v900_v26, 0.0 }
 0x4ff   :  { %1015 = vmatmul.msk.f32.gmra.mxu2 %vm234_vm4, %v41_v33  ;;  %v821_v33 = vpop.permute.xlu0 %820 }
 0x500   :  { %v902_v27 = vpop.f32.mrf.mxu1 }
 0x501   :  { %v903_v28 = vadd.f32 %v902_v27, %v833_v12 }
 0x503   :  { %v912_v30 = vmax.f32 %v903_v28, 0.0 }
 0x56a   :  { %v726_v36 = vpop.f32.mrf.mxu2 }
 0x56b   :  { %v727_v52 = vadd.f32 %v726_v36, %v685_v34  ;;  %v894_v34 = vadd.f32 %v893_v4, %v821_v33 }
 0x56d   :  { %v754_v25 = vadd.f32 %v740_v54, %v727_v52  ;;  %v906_v36 = vmax.f32 %v894_v34, 0.0 }
 0x56f   :  { %v758_v6 = vmax.f32 %v754_v25, 0.0 }
 0x572   :  { %v729_v40 = vpop.f32.mrf.mxu2 }
 0x573   :  { %v730_v48 = vadd.f32 %v729_v40, %v688_v37  ;;  %v914_v40 = vpop.permute.xlu1 %913 }
 0x574   :  { %1050 = vpush %v914_v40 }
 0x575   :  { %v755_v5 = vadd.f32 %v744_v51, %v730_v48 }
 0x577   :  { %v759_v23 = vmax.f32 %v755_v5, 0.0 }
 0x57a   :  { %v732_v42 = vpop.f32.mrf.mxu2 }
 0x57b   :  { %v733_v45 = vadd.f32 %v732_v42, %v691_v41 }
 0x57d   :  { %v756_v53 = vadd.f32 %v748_v46, %v733_v45 }
 0x57f   :  { %v760_v1 = vmax.f32 %v756_v53, 0.0 }
 0x582   :  { %v735_v47 = vpop.f32.mrf.mxu2 }
 0x583   :  { %v736_v49 = vadd.f32 %v735_v47, %v694_v44 }
 0x585   :  { %v757_v0 = vadd.f32 %v752_v43, %v736_v49 }
 0x587   :  { %v761_v56 = vmax.f32 %v757_v0, 0.0 }
 0x589   :  { %802 = vmatpush.msrb.mxu3 %v761_v56 }
 0x58b   :  { %803 = vmatpush.msrb.mxu3 %v760_v1 }
 0x58d   :  { %804 = vmatpush.msrb.mxu3 %v759_v23 }
 0x58f   :  { %805 = vmatpush.msrb.mxu3 %v758_v6 }
 0x590   :  { %1016 = vmatmul.msk.f32.vlgmr.msrb.gmra.mxu3 %vm234_vm4, %v46_v35 }
 0x591   :  { %953 = vmatpush.msra.mxu3 %v912_v30 }
 0x593   :  { %954 = vmatpush.msra.mxu3 %v910_v31 }
 0x595   :  { %955 = vmatpush.msra.mxu3 %v908_v32 }
 0x597   :  { %956 = vmatpush.msra.mxu3 %v906_v36 }
 0x598   :  { %1017 = vmatmul.msk.f32.gmra.mxu3 %vm234_vm4, %v47_v57 }
 0x5a0   :  { %1018 = vmatmul.msk.f32.gmra.mxu3 %vm234_vm4, %v48_v39 }
 0x5a5   :  { %s1051_s0 = spop %1050 }
 0x5a6   :  { %v916_v53 = vstv %s1051_s0 }
 0x5a8   :  { %1019 = vmatmul.msk.f32.gmra.mxu3 %vm234_vm4, %v49_v58 }
 0x5b0   :  { %1029 = vmatmul.msk.f32.vlgmr.msra.gmra.mxu3 %vm234_vm4, %v54_v38 }
 0x613   :  { %v807_v2 = vpop.f32.mrf.mxu3 }
 0x614   :  { %v808_v22 = vadd.f32 %v807_v2, %v764_v20 }
 0x61b   :  { %v810_v60 = vpop.f32.mrf.mxu3 }
 0x61c   :  { %v811_v17 = vadd.f32 %v810_v60, %v768_v18 }
 0x623   :  { %v813_v63 = vpop.f32.mrf.mxu3 }
 0x624   :  { %v814_v19 = vadd.f32 %v813_v63, %v772_v13 }
 0x62b   :  { %v816_v14 = vpop.f32.mrf.mxu3 }
 0x62c   :  { %v817_v16 = vadd.f32 %v816_v14, %v776_v11 }
 0x62e   :  { %859 = vmatpush.msrb.mxu0 %v817_v16 }
 0x630   :  { %860 = vmatpush.msrb.mxu0 %v814_v19 }
 0x632   :  { %861 = vmatpush.msrb.mxu0 %v811_v17 }
 0x633   :  { %v958_v0 = vpop.f32.mrf.mxu3 }
 0x634   :  { %862 = vmatpush.msrb.mxu0 %v808_v22  ;;  %v959_v54 = vadd.f32 %v958_v0, %v916_v53 }
 0x635   :  { %1020 = vmatmul.msk.f32.vlgmr.msrb.gmra.mxu0 %vm234_vm4, %v50_v59 }
 0x636   :  { %962 = vst [vmem:[#allocation2 + $0x8] sm:$0xff] %v959_v54 }
 0x63d   :  { %1021 = vmatmul.msk.f32.gmra.mxu0 %vm234_vm4, %v51_v61 }
 0x645   :  { %1022 = vmatmul.msk.f32.gmra.mxu0 %vm234_vm4, %v52_v50 }
 0x64d   :  { %1023 = vmatmul.msk.f32.gmra.mxu0 %vm234_vm4, %v53_v62 }
 0x6b2   :  { %v864_v37 = vpop.f32.mrf.mxu0 }
 0x6b3   :  { %v865_v48 = vadd.f32 %v864_v37, %v821_v33 }
 0x6b5   :  { %v905_v52 = vmax.f32 %v865_v48, 0.0 }
 0x6ba   :  { %v867_v41 = vpop.f32.mrf.mxu0 }
 0x6bb   :  { %v868_v46 = vadd.f32 %v867_v41, %v825_v21 }
 0x6bd   :  { %v907_v51 = vmax.f32 %v868_v46, 0.0 }
 0x6c2   :  { %v870_v42 = vpop.f32.mrf.mxu0 }
 0x6c3   :  { %v871_v44 = vadd.f32 %v870_v42, %v829_v15 }
 0x6c5   :  { %v909_v49 = vmax.f32 %v871_v44, 0.0 }
 0x6ca   :  { %v873_v43 = vpop.f32.mrf.mxu0 }
 0x6cb   :  { %v874_v45 = vadd.f32 %v873_v43, %v833_v12 }
 0x6cd   :  { %v911_v47 = vmax.f32 %v874_v45, 0.0 }
 0x6cf   :  { %933 = vmatpush.msra.mxu2 %v911_v47 }
 0x6d1   :  { %934 = vmatpush.msra.mxu2 %v909_v49 }
 0x6d3   :  { %935 = vmatpush.msra.mxu2 %v907_v51 }
 0x6d5   :  { %936 = vmatpush.msra.mxu2 %v905_v52 }
 0x6d6   :  { %1028 = vmatmul.msk.f32.vlgmr.msra.gmra.mxu2 %vm234_vm4, %v54_v38 }
 0x759   :  { %v938_v5 = vpop.f32.mrf.mxu2 }
 0x75a   :  { %v939_v56 = vadd.f32 %v938_v5, %v916_v53 }
 0x75c   :  { %961 = vst [vmem:[#allocation2] sm:$0xff] %v939_v56 }
 0x75d   :  { %973 = dma.vmem_to_hbm [thread:$0]  %s969_s6, 256, %s971_s9, [#allocation3]  }
 0x75e   :  { %1127 = dma.done.wait [#allocation3], 256  }
 0x75f   :  { %1128 = vsyncadd [#allocation3], 4294967040 }
 0x760   :  { %978 = vsyncpa [#allocation3], 1 }

</bundles_post_ra>
